<compile_context>
chip_gen: v7x
topology: tpu7x:2x2x1
jax: 0.10.0
libtpu: 0.0.40
codegen_flags: <defaults>
</compile_context>

<pallas_src>
import functools

import jax
import jax.numpy as jnp
from jax.experimental import pallas as pl
from jax.experimental.pallas import tpu as pltpu


def _attention_kernel(enc_ref, dec_ref, we_t_ref, wd_t_ref, b_att_ref, wf_ref,
                      awe_ref, alpha_ref, *, num_pixels):
    """One batch element per grid step.

    Shapes (inside the kernel, all in VMEM):
      enc_ref   : (P_pad, E)  native dtype
      dec_ref   : (1, D)      native dtype
      we_t_ref  : (E, A)      native dtype (pre-transposed W_enc)
      wd_t_ref  : (D, A)      native dtype (pre-transposed W_dec)
      b_att_ref : (1, A)      f32  (b_enc + b_dec fused)
      wf_ref    : (1, A)      f32  (W_full row)
      awe_ref   : (1, E)
      alpha_ref : (1, P_pad)  f32
    """
    enc = enc_ref[...]                                           # (P_pad, E), no upcast

    # encoder projection on the MXU: (P_pad, E) @ (E, A) -> f32 accumulate
    att1 = jnp.dot(enc, we_t_ref[...], preferred_element_type=jnp.float32)

    # decoder projection (tiny): (1, D) @ (D, A) -> f32, plus fused bias (b_enc + b_dec)
    att2 = jnp.dot(dec_ref[...], wd_t_ref[...], preferred_element_type=jnp.float32)
    att2 = att2 + b_att_ref[...]

    # relu(att1 + att2) on the VPU in f32 (fast path on v5e too)
    h = jnp.maximum(att1 + att2, 0.0)                            # (P_pad, A) f32

    # full_att projection on the MXU, producing a lane-dense (1, P_pad) score row:
    # contract (1, A) with (P_pad, A) over A. (b_full is dropped: softmax shift-invariant.)
    scores = jax.lax.dot_general(
        wf_ref[...], h,
        dimension_numbers=(((1,), (1,)), ((), ())),
        preferred_element_type=jnp.float32)                      # (1, P_pad)

    # mask padded pixel lanes so they get zero probability
    lane = jax.lax.broadcasted_iota(jnp.int32, scores.shape, 1)
    scores = jnp.where(lane < num_pixels, scores, jnp.float32(-1e30))

    # softmax over pixels (lane axis); reciprocal goes to the EUP slot
    m = jnp.max(scores, axis=-1, keepdims=True)
    e = jnp.exp(scores - m)
    s = jnp.sum(e, axis=-1, keepdims=True)
    alpha = e * pl.reciprocal(s, approx=True)                    # (1, P_pad) f32

    # attention-weighted encoding on the MXU: (1, P_pad) @ (P_pad, E) -> (1, E)
    awe = jnp.dot(alpha.astype(enc.dtype), enc,
                  preferred_element_type=jnp.float32)

    awe_ref[...] = awe.astype(awe_ref.dtype)
    alpha_ref[...] = alpha.astype(alpha_ref.dtype)


@jax.jit
def attention_forward(encoder_out, decoder_hidden, params):
    """Pallas wrapper. encoder_out: (B, P, E), decoder_hidden: (B, D)."""
    B, P, E = encoder_out.shape
    D = decoder_hidden.shape[1]
    A = params["W_enc"].shape[0]
    dt = encoder_out.dtype

    # Lane-dense alpha output: pad P up to a multiple of 128 (masked in-kernel).
    P_pad = max(128, ((P + 127) // 128) * 128)
    enc_p = encoder_out
    if P_pad != P:
        enc_p = jnp.pad(encoder_out, ((0, 0), (0, P_pad - P), (0, 0)))

    # Pre-transpose weights to (in, out) so the kernel never transposes on the XLU.
    we_t = params["W_enc"].T.astype(dt)                          # (E, A)
    wd_t = params["W_dec"].T.astype(dt)                          # (D, A)
    # b_full dropped (softmax shift invariance); fold b_enc into the decoder-side bias.
    b_att = (params["b_enc"] + params["b_dec"]).reshape(1, A).astype(jnp.float32)
    wf = params["W_full"].reshape(1, A).astype(jnp.float32)

    dec3 = decoder_hidden.reshape(B, 1, D)

    kernel = functools.partial(_attention_kernel, num_pixels=P)

    awe3, alpha3 = pl.pallas_call(
        kernel,
        out_shape=(jax.ShapeDtypeStruct((B, 1, E), dt),
                   jax.ShapeDtypeStruct((B, 1, P_pad), jnp.float32)),
        grid=(B,),
        in_specs=[
            pl.BlockSpec((None, P_pad, E), lambda b: (b, 0, 0)),   # encoder_out (padded)
            pl.BlockSpec((None, 1, D),     lambda b: (b, 0, 0)),   # decoder_hidden
            pl.BlockSpec((E, A),           lambda b: (0, 0)),      # W_enc^T
            pl.BlockSpec((D, A),           lambda b: (0, 0)),      # W_dec^T
            pl.BlockSpec((1, A),           lambda b: (0, 0)),      # b_enc + b_dec
            pl.BlockSpec((1, A),           lambda b: (0, 0)),      # W_full row
        ],
        out_specs=(pl.BlockSpec((None, 1, E),     lambda b: (b, 0, 0)),
                   pl.BlockSpec((None, 1, P_pad), lambda b: (b, 0, 0))),
        compiler_params=pltpu.CompilerParams(
            dimension_semantics=("parallel",),       # 2x on v7x (dual TC); no-op on v5e/v6e
            vmem_limit_bytes=32 * 1024 * 1024),      # safe on v7x's smaller VMEM
    )(enc_p, dec3, we_t, wd_t, b_att, wf)

    awe = awe3.reshape(B, E)
    alpha = alpha3.reshape(B, P_pad)[:, :P]
    return awe, alpha


def init_params(key, encoder_dim, decoder_dim, attention_dim, dtype=jnp.float32):
    """Deterministic synthetic parameters (nn.Linear shapes: W = (out, in))."""
    ks = jax.random.split(key, 6)
    scale = 0.1
    return {
        "W_enc":  scale * jax.random.normal(ks[0], (attention_dim, encoder_dim), dtype),
        "b_enc":  scale * jax.random.normal(ks[1], (attention_dim,), dtype),
        "W_dec":  scale * jax.random.normal(ks[2], (attention_dim, decoder_dim), dtype),
        "b_dec":  scale * jax.random.normal(ks[3], (attention_dim,), dtype),
        "W_full": scale * jax.random.normal(ks[4], (1, attention_dim), dtype),
        "b_full": scale * jax.random.normal(ks[5], (1,), dtype),
    }


def attention_reference(encoder_out, decoder_hidden, params):
    """Pure-JAX reference for validation (mirrors the PyTorch forward exactly)."""
    att1 = jnp.einsum("bpe,ae->bpa", encoder_out, params["W_enc"]) + params["b_enc"]
    att2 = jnp.einsum("bd,ad->ba", decoder_hidden, params["W_dec"]) + params["b_dec"]
    h = jax.nn.relu(att1 + att2[:, None, :])
    att = jnp.einsum("bpa,oa->bpo", h, params["W_full"])[..., 0] + params["b_full"][0]
    alpha = jax.nn.softmax(att, axis=1)
    awe = jnp.sum(encoder_out * alpha[:, :, None], axis=1)
    return awe, alpha


if __name__ == "__main__":
    # Small shapes consistent with the module's forward:
    #   encoder_out: (batch, num_pixels, encoder_dim), decoder_hidden: (batch, decoder_dim)
    B, P = 2, 16
    encoder_dim, decoder_dim, attention_dim = 32, 32, 32

    key = jax.random.PRNGKey(0)
    k_enc, k_dec, k_par = jax.random.split(key, 3)

    encoder_out = jax.random.normal(k_enc, (B, P, encoder_dim), jnp.float32)
    decoder_hidden = jax.random.normal(k_dec, (B, decoder_dim), jnp.float32)
    params = init_params(k_par, encoder_dim, decoder_dim, attention_dim)

    awe, alpha = attention_forward(encoder_out, decoder_hidden, params)
    jax.block_until_ready((awe, alpha))

    awe_ref, alpha_ref = attention_reference(encoder_out, decoder_hidden, params)
    assert awe.shape == (B, encoder_dim) and alpha.shape == (B, P)
    # Tolerances account for the EUP approximate reciprocal in the softmax
    # normalization (relative error ~1e-4); everything else is exact f32.
    assert jnp.allclose(awe, awe_ref, atol=2e-3, rtol=2e-3)
    assert jnp.allclose(alpha, alpha_ref, atol=2e-3, rtol=2e-3)
    assert jnp.allclose(jnp.sum(alpha, axis=1), 1.0, atol=2e-3)

    print("KERNEL_OK")
</pallas_src>

<mosaic_0001>
module attributes {stable_mosaic.version = 11 : i64} {
  func.func @_attention_kernel(%arg0: i32, %arg1: memref<1x128x32xf32, #tpu.memory_space<vmem>>, %arg2: memref<1x1x32xf32, #tpu.memory_space<vmem>>, %arg3: memref<32x32xf32, #tpu.memory_space<vmem>>, %arg4: memref<32x32xf32, #tpu.memory_space<vmem>>, %arg5: memref<1x32xf32, #tpu.memory_space<vmem>>, %arg6: memref<1x32xf32, #tpu.memory_space<vmem>>, %arg7: memref<1x1x32xf32, #tpu.memory_space<vmem>>, %arg8: memref<1x1x128xf32, #tpu.memory_space<vmem>>) attributes {dimension_semantics = [#tpu.dimension_semantics<parallel>], iteration_bounds = array<i64: 2>, scalar_prefetch = 0 : i64, scratch_operands = 0 : i64, tpu.core_type = #tpu.core_type<tc>, window_params = [{transform_indices = @transform_0, window_bounds = array<i64: 1, 128, 32>}, {transform_indices = @transform_1, window_bounds = array<i64: 1, 1, 32>}, {pipeline_mode = #tpu.pipeline_mode<synchronous>, transform_indices = @transform_2, window_bounds = array<i64: 32, 32>}, {pipeline_mode = #tpu.pipeline_mode<synchronous>, transform_indices = @transform_3, window_bounds = array<i64: 32, 32>}, {pipeline_mode = #tpu.pipeline_mode<synchronous>, transform_indices = @transform_4, window_bounds = array<i64: 1, 32>}, {pipeline_mode = #tpu.pipeline_mode<synchronous>, transform_indices = @transform_5, window_bounds = array<i64: 1, 32>}, {transform_indices = @transform_6, window_bounds = array<i64: 1, 1, 32>}, {transform_indices = @transform_7, window_bounds = array<i64: 1, 1, 128>}]} {
    %c0 = arith.constant 0 : index
    %c0_0 = arith.constant 0 : index
    %c0_1 = arith.constant 0 : index
    %0 = vector.load %arg1[%c0, %c0_0, %c0_1] : memref<1x128x32xf32, #tpu.memory_space<vmem>>, vector<1x128x32xf32>
    %1 = vector.shape_cast %0 : vector<1x128x32xf32> to vector<128x32xf32>
    %c0_2 = arith.constant 0 : index
    %c0_3 = arith.constant 0 : index
    %2 = vector.load %arg3[%c0_2, %c0_3] : memref<32x32xf32, #tpu.memory_space<vmem>>, vector<32x32xf32>
    %cst = arith.constant dense<0.000000e+00> : vector<128x32xf32>
    %3 = tpu.matmul %1, %2, %cst {dimension_numbers = #tpu.dot_dimension_numbers<[1], [0], [0], [1], [0, 0, 1, 1], [], []>} : vector<128x32xf32>, vector<32x32xf32>, vector<128x32xf32> -> vector<128x32xf32>
    %c0_4 = arith.constant 0 : index
    %c0_5 = arith.constant 0 : index
    %c0_6 = arith.constant 0 : index
    %4 = vector.load %arg2[%c0_4, %c0_5, %c0_6] : memref<1x1x32xf32, #tpu.memory_space<vmem>>, vector<1x1x32xf32>
    %5 = vector.shape_cast %4 : vector<1x1x32xf32> to vector<1x32xf32>
    %c0_7 = arith.constant 0 : index
    %c0_8 = arith.constant 0 : index
    %6 = vector.load %arg4[%c0_7, %c0_8] : memref<32x32xf32, #tpu.memory_space<vmem>>, vector<32x32xf32>
    %cst_9 = arith.constant dense<0.000000e+00> : vector<1x32xf32>
    %7 = tpu.matmul %5, %6, %cst_9 {dimension_numbers = #tpu.dot_dimension_numbers<[1], [0], [0], [1], [0, 0, 1, 1], [], []>} : vector<1x32xf32>, vector<32x32xf32>, vector<1x32xf32> -> vector<1x32xf32>
    %c0_10 = arith.constant 0 : index
    %c0_11 = arith.constant 0 : index
    %8 = vector.load %arg5[%c0_10, %c0_11] : memref<1x32xf32, #tpu.memory_space<vmem>>, vector<1x32xf32>
    %9 = arith.addf %7, %8 : vector<1x32xf32>
    %10 = vector.broadcast %9 : vector<1x32xf32> to vector<128x32xf32>
    %11 = arith.addf %3, %10 : vector<128x32xf32>
    %cst_12 = arith.constant 0.000000e+00 : f32
    %12 = vector.broadcast %cst_12 : f32 to vector<128x32xf32>
    %13 = arith.maximumf %11, %12 : vector<128x32xf32>
    %c0_13 = arith.constant 0 : index
    %c0_14 = arith.constant 0 : index
    %14 = vector.load %arg6[%c0_13, %c0_14] : memref<1x32xf32, #tpu.memory_space<vmem>>, vector<1x32xf32>
    %cst_15 = arith.constant dense<0.000000e+00> : vector<1x128xf32>
    %15 = tpu.matmul %14, %13, %cst_15 {dimension_numbers = #tpu.dot_dimension_numbers<[1], [1], [0], [0], [0, 0, 1, 0], [], []>} : vector<1x32xf32>, vector<128x32xf32>, vector<1x128xf32> -> vector<1x128xf32>
    %16 = tpu.iota {dimensions = array<i32: 1>} : vector<1x128xi32>
    %c16_i32 = arith.constant 16 : i32
    %17 = vector.broadcast %c16_i32 : i32 to vector<1x128xi32>
    %18 = arith.cmpi slt, %16, %17 : vector<1x128xi32>
    %cst_16 = arith.constant -1.000000e+30 : f32
    %19 = vector.broadcast %cst_16 : f32 to vector<1x128xf32>
    %20 = arith.select %18, %15, %19 : vector<1x128xi1>, vector<1x128xf32>
    %cst_17 = arith.constant dense<0xFF800000> : vector<1xf32>
    %21 = vector.multi_reduction <maximumf>, %20, %cst_17 [1] : vector<1x128xf32> to vector<1xf32>
    %22 = vector.shape_cast %21 : vector<1xf32> to vector<1x1xf32>
    %23 = vector.broadcast %22 : vector<1x1xf32> to vector<1x128xf32>
    %24 = arith.subf %20, %23 : vector<1x128xf32>
    %25 = math.exp %24 : vector<1x128xf32>
    %cst_18 = arith.constant dense<0.000000e+00> : vector<1xf32>
    %26 = vector.multi_reduction <add>, %25, %cst_18 [1] : vector<1x128xf32> to vector<1xf32>
    %27 = vector.shape_cast %26 : vector<1xf32> to vector<1x1xf32>
    %28 = tpu.reciprocal %27 {approx = true} : vector<1x1xf32> -> vector<1x1xf32>
    %29 = vector.broadcast %28 : vector<1x1xf32> to vector<1x128xf32>
    %30 = arith.mulf %25, %29 : vector<1x128xf32>
    %cst_19 = arith.constant dense<0.000000e+00> : vector<1x32xf32>
    %31 = tpu.matmul %30, %1, %cst_19 {dimension_numbers = #tpu.dot_dimension_numbers<[1], [0], [0], [1], [0, 0, 1, 1], [], []>} : vector<1x128xf32>, vector<128x32xf32>, vector<1x32xf32> -> vector<1x32xf32>
    %c0_20 = arith.constant 0 : index
    %c0_21 = arith.constant 0 : index
    %c0_22 = arith.constant 0 : index
    %32 = vector.load %arg7[%c0_20, %c0_21, %c0_22] : memref<1x1x32xf32, #tpu.memory_space<vmem>>, vector<1x1x32xf32>
    %33 = vector.shape_cast %32 : vector<1x1x32xf32> to vector<1x32xf32>
    %34 = vector.shape_cast %31 : vector<1x32xf32> to vector<1x1x32xf32>
    tpu.vector_store %arg7[%c0_20, %c0_21, %c0_22], %34 {strides = array<i32>} : memref<1x1x32xf32, #tpu.memory_space<vmem>>, vector<1x1x32xf32>,
    %c0_23 = arith.constant 0 : index
    %c0_24 = arith.constant 0 : index
    %c0_25 = arith.constant 0 : index
    %35 = vector.load %arg8[%c0_23, %c0_24, %c0_25] : memref<1x1x128xf32, #tpu.memory_space<vmem>>, vector<1x1x128xf32>
    %36 = vector.shape_cast %35 : vector<1x1x128xf32> to vector<1x128xf32>
    %37 = vector.shape_cast %30 : vector<1x128xf32> to vector<1x1x128xf32>
    tpu.vector_store %arg8[%c0_23, %c0_24, %c0_25], %37 {strides = array<i32>} : memref<1x1x128xf32, #tpu.memory_space<vmem>>, vector<1x1x128xf32>,
    return
  }
  func.func @transform_0(%arg0: i32) -> (i32, i32, i32) {
    %c0_i32 = arith.constant 0 : i32
    %c0_i32_0 = arith.constant 0 : i32
    %c0_i32_1 = arith.constant 0 : i32
    return %arg0, %c0_i32, %c0_i32_0 : i32, i32, i32
  }
  func.func @transform_1(%arg0: i32) -> (i32, i32, i32) {
    %c0_i32 = arith.constant 0 : i32
    %c0_i32_0 = arith.constant 0 : i32
    %c0_i32_1 = arith.constant 0 : i32
    return %arg0, %c0_i32, %c0_i32_0 : i32, i32, i32
  }
  func.func @transform_2(%arg0: i32) -> (i32, i32) {
    %c0_i32 = arith.constant 0 : i32
    %c0_i32_0 = arith.constant 0 : i32
    %c0_i32_1 = arith.constant 0 : i32
    return %c0_i32, %c0_i32_0 : i32, i32
  }
  func.func @transform_3(%arg0: i32) -> (i32, i32) {
    %c0_i32 = arith.constant 0 : i32
    %c0_i32_0 = arith.constant 0 : i32
    %c0_i32_1 = arith.constant 0 : i32
    return %c0_i32, %c0_i32_0 : i32, i32
  }
  func.func @transform_4(%arg0: i32) -> (i32, i32) {
    %c0_i32 = arith.constant 0 : i32
    %c0_i32_0 = arith.constant 0 : i32
    %c0_i32_1 = arith.constant 0 : i32
    return %c0_i32, %c0_i32_0 : i32, i32
  }
  func.func @transform_5(%arg0: i32) -> (i32, i32) {
    %c0_i32 = arith.constant 0 : i32
    %c0_i32_0 = arith.constant 0 : i32
    %c0_i32_1 = arith.constant 0 : i32
    return %c0_i32, %c0_i32_0 : i32, i32
  }
  func.func @transform_6(%arg0: i32) -> (i32, i32, i32) {
    %c0_i32 = arith.constant 0 : i32
    %c0_i32_0 = arith.constant 0 : i32
    %c0_i32_1 = arith.constant 0 : i32
    return %arg0, %c0_i32, %c0_i32_0 : i32, i32, i32
  }
  func.func @transform_7(%arg0: i32) -> (i32, i32, i32) {
    %c0_i32 = arith.constant 0 : i32
    %c0_i32_0 = arith.constant 0 : i32
    %c0_i32_1 = arith.constant 0 : i32
    return %arg0, %c0_i32, %c0_i32_0 : i32, i32, i32
  }
}

</mosaic_0001>

<bundles_post_ra>
// kernel: attention_forward.1
= control target key start
LH: loop header
LB: loop body
LE: loop exit
PB: predicated region body
PF: predicated region fallthrough
CT: control target
= control target key end

     0   :  { %13 = vsyncpa [#allocation3], 0  ;;  %s1674_s0 = inlined_call_operand.vmem [shape: f32[2,128,32], index: 0, kind: input, shape index: {}]   ;;  %s1675_s1 = inlined_call_operand.vmem [shape: f32[2,1,32], index: 1, kind: input, shape index: {}]   ;;  %s1676_s2 = inlined_call_operand.vmem [shape: f32[32,32], index: 2, kind: input, shape index: {}]   ;;  %s1677_s3 = inlined_call_operand.vmem [shape: f32[32,32], index: 3, kind: input, shape index: {}]   ;;  %s1678_s4 = inlined_call_operand.vmem [shape: f32[1,32], index: 4, kind: input, shape index: {}]   ;;  %s1679_s5 = inlined_call_operand.vmem [shape: f32[1,32], index: 5, kind: input, shape index: {}]   ;;  %s1680_s6 = inlined_call_operand.hbm [shape: f32[2,1,32], index: 6, kind: output, shape index: {0}]   ;;  %s1681_s7 = inlined_call_operand.hbm [shape: f32[2,1,128], index: 7, kind: output, shape index: {1}]  }
   0x1   :  { %15 = vsyncpa [#allocation3 + $0x1], 0 }
   0x2   :  { %16 = vsyncpa [#allocation5], 0 }
   0x3   :  { %18 = vsyncpa [#allocation5 + $0x1], 0  ;;  %s1425_s24 = smov 0   ;;  %s1427_s25 = smov 0  }
   0x4   :  { %s1429_s26 = smov 0   ;;  %s1431_s27 = smov 0  }
   0x5 LB: > { %s1446_s28 = sadd.s32 4294967295, %s1378_s27   ;;  %s946_s29 = sadd.s32 4294967294, %s1378_s27   ;;  %s1378_s27 = sphi %s1431_s27, %s1689_s27   ;;  %s1374_s26 = sphi %s1429_s26, %s1688_s26   ;;  %s1370_s25 = sphi %s1427_s25, %s1687_s25   ;;  %s1366_s24 = sphi %s1425_s24, %s1686_s24  }
   0x6   : > { %s1450_s30 = sadd.s32 1, %s1378_s27   ;;  %s167_s8 = sadd.s32 1, %s1374_s26 }
   0x7   : > { %s164_s9 = ssub.s32 %s1378_s27, %s1450_s30  ;;  %p177_p0 = scmp.ne.s32.totalorder %s1374_s26, %s1370_s25 }
   0x8   : > { %p165_p1 = scmp.eq.s32.totalorder %s164_s9, 0  ;;  %p178_p2 = scmp.eq.s32.totalorder %s1446_s28, 1 }
   0x9   : > { %p183_p3 = scmp.ne.s32.totalorder %s1370_s25, %s1366_s24  ;;  %p184_p4 = scmp.eq.s32.totalorder %s946_s29, 1 }
   0xa   : > { %s1461_s10 = scalar_select %p165_p1, %s1374_s26, %s167_s8  }
   0xb   : > { %p1463_p5 = por %p178_p2, %p177_p0  ;;  %p1467_p6 = por %p184_p4, %p183_p3 }
   0xc   : > { %p949_p7 = scmp.ge.s32.totalorder %s1378_s27, 1  ;;  %p254_p8 = scmp.lt.s32.totalorder %s1378_s27, 3 }
   0xe   : > { %p255_p9 = pnand %p949_p7, %p254_p8 }
   0xf   : > { %v321_v0 = vld [vmem:[%s1677_s3] sm:$0xff] (!%p255_p9)  ;;  %v322_v1 = vld [vmem:[%s1677_s3 + $0x8] sm:$0xff] (!%p255_p9)  ;;  %v323_v2 = vld [vmem:[%s1677_s3 + $0x10] sm:$0xff] (!%p255_p9)  ;;  %v1380_v3 = vmov (!%p255_p9), 0.0|0.0   ;;  %vm1381_vm0 = vmmov (!%p255_p9), 0   ;;  %v1382_v6 = vmov (!%p255_p9), 0.0   ;;  %v400_v39 = vlaneseq (!%p255_p9) }
  0x10   : > { %258 = sbr.rel (%p255_p9) target bundleno = 1070 (0x42e), region = 44  ;;  %1163 = vmatprep.subr.bf16.mxu1 (!%p255_p9), %v1380_v3  ;;  %v1164_v4 = vpack.c.bf16 (!%p255_p9), %v322_v1, %v321_v0  ;;  %v324_v5 = vld [vmem:[%s1677_s3 + $0x18] sm:$0xff] (!%p255_p9)  ;;  %1058 = vmatprep.mubr.msk.f32.mxu1 (!%p255_p9), %vm1381_vm0, %v1382_v6  ;;  %p292_p10 = scmp.lt.s32.totalorder (!%p255_p9), %s1446_s28, 1  ;;  %v316_v7 = vld [vmem:[%s1676_s2] sm:$0xff] (!%p255_p9)  ;;  %v317_v8 = vld [vmem:[%s1676_s2 + $0x8] sm:$0xff] (!%p255_p9)  ;;  %vm326_vm1 = vcmask (!%p255_p9), 261120  }
  0x11   : > { %1177 = vmatprep.subr.bf16.mxu0 (!%p255_p9), %v1380_v3  ;;  %1125 = vmatprep.mubr.msk.f32.mxu0 (!%p255_p9), %vm1381_vm0, %v1382_v6  ;;  %v1167_v9 = vpack.c.bf16 (!%p255_p9), %v324_v5, %v323_v2  ;;  %v1169_v10 = vpack.c.bf16 (!%p255_p9), %v317_v8, %v316_v7  ;;  %v318_v11 = vld [vmem:[%s1676_s2 + $0x10] sm:$0xff] (!%p255_p9)  ;;  %v319_v12 = vld [vmem:[%s1676_s2 + $0x18] sm:$0xff] (!%p255_p9)  ;;  %v401_v40 = vshrl.u32 (!%p255_p9), %v400_v39, 7  ;;  %v325_v41 = vld [vmem:[%s1678_s4] sm:$0x1] (!%p255_p9)  ;;  %vm739_vm4 = vcmask (!%p255_p9), 1040384  }
  0x12   : > { %1165 = vmatpush3.bf16.msra.mxu1 (!%p255_p9), %v1164_v4  ;;  %v1173_v14 = vpack.c.bf16 (!%p255_p9), %v319_v12, %v318_v11  ;;  %vm1563_vm2 = vmpackc.low (!%p255_p9), %vm326_vm1, %vm326_vm1  ;;  %s1596_s13 = sand.u32 (!%p255_p9), 1, %s1370_s25  }
  0x13   : > { %1166 = vmatprep.subr.bf16.mxu1 (!%p255_p9), %v1380_v3  ;;  %v402_v45 = vsub.s32 (!%p255_p9), 0, %v401_v40  ;;  %s291_s14 = scalar_lea.vmem (!%p255_p9), [#allocation4], %s1596_s13  ;;  %s829_s20 = scalar_lea.sflag (!%p255_p9), [#allocation5], %s1596_s13 }
  0x14   : > { %s854_s19 = sshll.u32 (!%p255_p9), %s291_s14, 4  ;;  %s855_s19 = int_to_ptr.vmem [resolvable:$true] %s854_s19 }
  0x15   : > { %s1284_s21 = scalar_lea.vmem (!%p255_p9), %s855_s19, 16 }
  0x16   : > { %1168 = vmatpush3.bf16.msra.mxu1 (!%p255_p9), %v1167_v9  ;;  %p1285_p11 = scmp.ne.s32.totalorder (!%p255_p9), %s855_s19, %s1284_s21 }
  0x17   : > { %s293_s8 = scalar_select %p292_p10, %s1446_s28, 1  ;;  %1170 = vmatprep.subr.bf16.mxu1 %v1169_v10 }
  0x18   : > { %p1286_p12 = pnand %p1285_p11, %p1463_p5 }
  0x19   : > { %s990_s9 = sshll.u32 %s293_s8, 7  ;;  %s299_s15 = scalar_lea.vmem %s1675_s1, %s293_s8 }
  0x1a   : > { %s1512_s22 = scalar_lea.vmem %s1674_s0, %s990_s9  ;;  %v320_v13 = vld [vmem:[%s299_s15] sm:$0x1]  ;;  %s986_s15 = sshll.u32 %s1446_s28, 4 }
  0x1b   : > { %v300_v15 = vld [vmem:[%s1512_s22] sm:$0xff]  ;;  %1059 = vmatmul.mubr.msk.f32.vlgmr.msra.gmra.mrb[0].mxu1 %vm326_vm1, %v320_v13  ;;  %v301_v16 = vld [vmem:[%s1512_s22 + $0x8] sm:$0xff]  ;;  %v302_v18 = vld [vmem:[%s1512_s22 + $0x10] sm:$0xff]  ;;  %s1605_s18 = scalar_lea.hbm %s1681_s7, %s986_s15  ;;  %p1287_p13 = pneg %p1286_p12 }
  0x1c   : > { %1172 = vmatpush3.bf16.msra.mxu1 %v1169_v10  ;;  %1069 = vmatprep.mubr.msk.f32.mxu1 %vm326_vm1, %v300_v15  ;;  %v1210_v17 = vpack.c.bf16 %v301_v16, %v300_v15  ;;  %v303_v19 = vld [vmem:[%s1512_s22 + $0x18] sm:$0xff]  ;;  %v304_v21 = vld [vmem:[%s1512_s22 + $0x20] sm:$0xff]  ;;  %v305_v22 = vld [vmem:[%s1512_s22 + $0x28] sm:$0xff] }
  0x1d   : > { %1174 = vmatprep.subr.bf16.mxu1 %v1173_v14  ;;  %v1213_v20 = vpack.c.bf16 %v303_v19, %v302_v18  ;;  %v1216_v23 = vpack.c.bf16 %v305_v22, %v304_v21  ;;  %v306_v24 = vld [vmem:[%s1512_s22 + $0x30] sm:$0xff]  ;;  %v307_v25 = vld [vmem:[%s1512_s22 + $0x38] sm:$0xff]  ;;  %v308_v27 = vld [vmem:[%s1512_s22 + $0x40] sm:$0xff] }
  0x1e   : > { %v1219_v26 = vpack.c.bf16 %v307_v25, %v306_v24  ;;  %v309_v28 = vld [vmem:[%s1512_s22 + $0x48] sm:$0xff]  ;;  %v310_v30 = vld [vmem:[%s1512_s22 + $0x50] sm:$0xff]  ;;  %v311_v31 = vld [vmem:[%s1512_s22 + $0x58] sm:$0xff] }
  0x1f   : > { %v1222_v29 = vpack.c.bf16 %v309_v28, %v308_v27  ;;  %v1225_v32 = vpack.c.bf16 %v311_v31, %v310_v30  ;;  %v312_v33 = vld [vmem:[%s1512_s22 + $0x60] sm:$0xff]  ;;  %v313_v34 = vld [vmem:[%s1512_s22 + $0x68] sm:$0xff]  ;;  %v314_v36 = vld [vmem:[%s1512_s22 + $0x70] sm:$0xff] }
  0x20   : > { %1176 = vmatpush3.bf16.msra.mxu1 %v1173_v14  ;;  %v1228_v35 = vpack.c.bf16 %v313_v34, %v312_v33  ;;  %v315_v37 = vld [vmem:[%s1512_s22 + $0x78] sm:$0xff]  ;;  %s1383_s22 = smov [#allocation4]  }
  0x21   : > { %1209 = vmatprep.subr.bf16.mxu1 %v1380_v3  ;;  %v1231_v38 = vpack.c.bf16 %v315_v37, %v314_v36  ;;  %s1288_s23 = sshll.u32 %s1383_s22, 4  ;;  %s1289_s23 = int_to_ptr.vmem [resolvable:$false] %s1288_s23 }
  0x22   : > { %s1290_s29 = scalar_lea.vmem %s1289_s23, 32  ;;  %p1291_p0 = scmp.lt.s32.totalorder %s855_s19, %s1289_s23 }
  0x23   : > { %1070 = vmatmul.mubr.msk.f32.vlgmr.msra.gmra.mrb[2].mxu1 %vm326_vm1, %v301_v16  ;;  %p1292_p1 = scmp.lt.s32.totalorder %s1290_s29, %s1284_s21 }
  0x24   : > { %1072 = vmatprep.mubr.msk.f32.mxu1 %vm326_vm1, %v302_v18  ;;  %1211 = vmatpush3.bf16.msra.mxu1 %v1210_v17 }
  0x25   : > { %1212 = vmatprep.subr.bf16.mxu1 %v1380_v3  ;;  %p1293_p2 = por %p1292_p1, %p1291_p0 }
  0x27   : > { %1073 = vmatmul.mubr.msk.f32.gmra.mrb[4].mxu1 %vm326_vm1, %v303_v19  ;;  %p1294_p3 = pnand %p1293_p2, %p1287_p13 }
  0x28   : > { %1075 = vmatprep.mubr.msk.f32.mxu1 %vm326_vm1, %v304_v21  ;;  %1214 = vmatpush3.bf16.msra.mxu1 %v1213_v20 }
  0x29   : > { %1215 = vmatprep.subr.bf16.mxu1 %v1380_v3 }
  0x2b   : > { %1076 = vmatmul.mubr.msk.f32.gmra.mrb[6].mxu1 %vm326_vm1, %v305_v22 }
  0x2c   : > { %1078 = vmatprep.mubr.msk.f32.mxu1 %vm326_vm1, %v306_v24  ;;  %1217 = vmatpush3.bf16.msra.mxu1 %v1216_v23 }
  0x2d   : > { %1218 = vmatprep.subr.bf16.mxu1 %v1380_v3 }
  0x2f   : > { %1079 = vmatmul.mubr.msk.f32.gmra.mrb[8].mxu1 %vm326_vm1, %v307_v25 }
  0x30   : > { %1081 = vmatprep.mubr.msk.f32.mxu1 %vm326_vm1, %v308_v27  ;;  %1220 = vmatpush3.bf16.msra.mxu1 %v1219_v26 }
  0x31   : > { %1221 = vmatprep.subr.bf16.mxu1 %v1380_v3 }
  0x33   : > { %1082 = vmatmul.mubr.msk.f32.gmra.mrb[10].mxu1 %vm326_vm1, %v309_v28 }
  0x34   : > { %1084 = vmatprep.mubr.msk.f32.mxu1 %vm326_vm1, %v310_v30  ;;  %1223 = vmatpush3.bf16.msra.mxu1 %v1222_v29 }
  0x35   : > { %1224 = vmatprep.subr.bf16.mxu1 %v1380_v3 }
  0x37   : > { %1085 = vmatmul.mubr.msk.f32.gmra.mrb[12].mxu1 %vm326_vm1, %v311_v31 }
  0x38   : > { %1087 = vmatprep.mubr.msk.f32.mxu1 %vm326_vm1, %v312_v33  ;;  %1226 = vmatpush3.bf16.msra.mxu1 %v1225_v32 }
  0x39   : > { %1227 = vmatprep.subr.bf16.mxu1 %v1380_v3 }
  0x3b   : > { %1088 = vmatmul.mubr.msk.f32.gmra.mrb[14].mxu1 %vm326_vm1, %v313_v34 }
  0x3c   : > { %1090 = vmatprep.mubr.msk.f32.mxu1 %vm326_vm1, %v314_v36  ;;  %1229 = vmatpush3.bf16.msra.mxu1 %v1228_v35 }
  0x3d   : > { %1230 = vmatprep.subr.bf16.mxu1 %v1380_v3 }
  0x3f   : > { %1091 = vmatmul.mubr.msk.f32.gmra.mrb[16].mxu1 %vm326_vm1, %v315_v37 }
  0x40   : > { %1232 = vmatpush3.bf16.msra.mxu1 %v1231_v38  ;;  %1160 = vmatprep.mubr.msk.f32.mxu1 %vm1381_vm0, %v1382_v6 }
  0xee   : > { %v396_v42 = vpop.f32.mrb[0].mxu1 }
  0xef   : > { %v1060_v43 = vpop.f32.mrb[1].mxu1  ;;  %v397_v44 = vadd.f32 %v396_v42, %v325_v41  ;;  %v613_v42 = vld [vmem:[%s1679_s5] sm:$0x1] }
  0xf0   : > { %v736_v43 = vand.u32 127, %v400_v39 }
  0xf1   : > { %v403_v46 = vrot.slane %v397_v44, %v402_v45 }
  0xf2   : > { %vm737_vm3 = vcmp.lt.s32.totalorder %v736_v43, 16 }
  0xf6   : > { %v1071_v47 = vpop.f32.mrb[2].mxu1 }
  0xf7   : > { %v524_v48 = vadd.f32 %v1071_v47, %v403_v46  ;;  %v518_v49 = vpop.f32.mrb[3].mxu1 }
  0xf8   : > { %v519_v50 = vadd.f32 %v518_v49, %v403_v46 }
  0xf9   : > { %v598_v51 = vmax.f32 %v524_v48, 0.0 }
  0xfa   : > { %v597_v52 = vmax.f32 %v519_v50, 0.0  ;;  %v1074_v53 = vpop.f32.mrb[4].mxu1 }
  0xfb   : > { %v534_v54 = vadd.f32 %v1074_v53, %v403_v46  ;;  %v528_v55 = vpop.f32.mrb[5].mxu1 }
  0xfc   : > { %v1178_v57 = vpack.c.bf16 %v598_v51, %v597_v52  ;;  %v529_v58 = vadd.f32 %v528_v55, %v403_v46 }
  0xfd   : > { %v600_v59 = vmax.f32 %v534_v54, 0.0 }
  0xfe   : > { %v599_v60 = vmax.f32 %v529_v58, 0.0  ;;  %v1077_v61 = vpop.f32.mrb[6].mxu1  ;;  %1180 = vmatpush3.bf16.xpose.msk.msra.mxu0 %vm1563_vm2, %v1178_v57 }
  0xff   : > { %v544_v62 = vadd.f32 %v1077_v61, %v403_v46  ;;  %v538_v63 = vpop.f32.mrb[7].mxu1  ;;  %1181 = vmatprep.subr.bf16.mxu0 %v1380_v3 }
 0x100   : > { %v1182_v0 = vpack.c.bf16 %v600_v59, %v599_v60  ;;  %v539_v1 = vadd.f32 %v538_v63, %v403_v46 }
 0x101   : > { %v602_v2 = vmax.f32 %v544_v62, 0.0 }
 0x102   : > { %v601_v4 = vmax.f32 %v539_v1, 0.0  ;;  %v1080_v5 = vpop.f32.mrb[8].mxu1 }
 0x103   : > { %v554_v6 = vadd.f32 %v1080_v5, %v403_v46  ;;  %v548_v7 = vpop.f32.mrb[9].mxu1 }
 0x104   : > { %v1186_v8 = vpack.c.bf16 %v602_v2, %v601_v4  ;;  %v549_v9 = vadd.f32 %v548_v7, %v403_v46 }
 0x105   : > { %v604_v10 = vmax.f32 %v554_v6, 0.0 }
 0x106   : > { %v603_v11 = vmax.f32 %v549_v9, 0.0  ;;  %v1083_v12 = vpop.f32.mrb[10].mxu1  ;;  %1184 = vmatpush3.bf16.xpose.msk.msra.mxu0 %vm1563_vm2, %v1182_v0 }
 0x107   : > { %v564_v13 = vadd.f32 %v1083_v12, %v403_v46  ;;  %v558_v14 = vpop.f32.mrb[11].mxu1  ;;  %1185 = vmatprep.subr.bf16.mxu0 %v1380_v3 }
 0x108   : > { %v1190_v15 = vpack.c.bf16 %v604_v10, %v603_v11  ;;  %v559_v16 = vadd.f32 %v558_v14, %v403_v46 }
 0x109   : > { %v606_v17 = vmax.f32 %v564_v13, 0.0 }
 0x10a   : > { %v605_v18 = vmax.f32 %v559_v16, 0.0  ;;  %v1086_v19 = vpop.f32.mrb[12].mxu1 }
 0x10b   : > { %v574_v20 = vadd.f32 %v1086_v19, %v403_v46  ;;  %v568_v21 = vpop.f32.mrb[13].mxu1 }
 0x10c   : > { %v1194_v22 = vpack.c.bf16 %v606_v17, %v605_v18  ;;  %v569_v23 = vadd.f32 %v568_v21, %v403_v46 }
 0x10d   : > { %v608_v24 = vmax.f32 %v574_v20, 0.0 }
 0x10e   : > { %v607_v25 = vmax.f32 %v569_v23, 0.0  ;;  %v1089_v26 = vpop.f32.mrb[14].mxu1  ;;  %1188 = vmatpush3.bf16.xpose.msk.msra.mxu0 %vm1563_vm2, %v1186_v8 }
 0x10f   : > { %v584_v27 = vadd.f32 %v1089_v26, %v403_v46  ;;  %v578_v28 = vpop.f32.mrb[15].mxu1  ;;  %1189 = vmatprep.subr.bf16.mxu0 %v1380_v3 }
 0x110   : > { %v1198_v29 = vpack.c.bf16 %v608_v24, %v607_v25  ;;  %v579_v30 = vadd.f32 %v578_v28, %v403_v46 }
 0x111   : > { %v610_v31 = vmax.f32 %v584_v27, 0.0 }
 0x112   : > { %v609_v32 = vmax.f32 %v579_v30, 0.0  ;;  %v1092_v33 = vpop.f32.mrb[16].mxu1 }
 0x113   : > { %v594_v34 = vadd.f32 %v1092_v33, %v403_v46  ;;  %v588_v35 = vpop.f32.mrb[17].mxu1 }
 0x114   : > { %v1202_v36 = vpack.c.bf16 %v610_v31, %v609_v32  ;;  %v589_v37 = vadd.f32 %v588_v35, %v403_v46 }
 0x115   : > { %v612_v38 = vmax.f32 %v594_v34, 0.0 }
 0x116   : > { %v611_v40 = vmax.f32 %v589_v37, 0.0  ;;  %1192 = vmatpush3.bf16.xpose.msk.msra.mxu0 %vm1563_vm2, %v1190_v15 }
 0x117   : > { %1193 = vmatprep.subr.bf16.mxu0 %v1380_v3 }
 0x118   : > { %v1206_v41 = vpack.c.bf16 %v612_v38, %v611_v40 }
 0x11e   : > { %1196 = vmatpush3.bf16.xpose.msk.msra.mxu0 %vm1563_vm2, %v1194_v22 }
 0x11f   : > { %1197 = vmatprep.subr.bf16.mxu0 %v1380_v3 }
 0x126   : > { %1200 = vmatpush3.bf16.xpose.msk.msra.mxu0 %vm1563_vm2, %v1198_v29 }
 0x127   : > { %1201 = vmatprep.subr.bf16.mxu0 %v1380_v3 }
 0x12e   : > { %1204 = vmatpush3.bf16.xpose.msk.msra.mxu0 %vm1563_vm2, %v1202_v36 }
 0x12f   : > { %1205 = vmatprep.subr.bf16.mxu0 %v1380_v3 }
 0x136   : > { %1208 = vmatpush3.bf16.xpose.msk.msra.mxu0 %vm1563_vm2, %v1206_v41 }
 0x13d   : > { %1126 = vmatmul.mubr.msk.f32.vlgmr.msra.gmra.mrb[0].mxu0 %vm326_vm1, %v613_v42 }
 0x210   : > { %v731_v44 = vpop.f32.mrb[0].mxu0 }
 0x211   : > { %v738_v45 = vsel %vm737_vm3, %v731_v44, -1e+30  ;;  %v1127_v46 = vpop.f32.mrb[1].mxu0 }
 0x212   : > { %v740_v47 = vsel %vm739_vm4, %v738_v45, -inf }
 0x213   : > { %741 = vmax.xlane.f32.xlu0 %v740_v47 }
 0x2a0   : > { %v742_v3 = vpop.xlane.xlu0 %741 }
 0x2a1   : > { %v743_v48 = vsub.f32 %v738_v45, %v742_v3 }
 0x2a3   : > { %v744_v49 = vmul.f32 1.442695, %v743_v48 }
 0x2a5   : > { %1280 = vpow2.f32 %v744_v49 }
 0x2af   : > { %v1281_v50 = vpop.eup %1280 }
 0x2b0   : > { %v746_v51 = vsel %vm739_vm4, %v1281_v50, 0.0 }
 0x2b1   : > { %747 = vadd.xlane.f32.xlu0 %v746_v51 }
 0x33e   : > { %v748_v52 = vpop.xlane.xlu0 %747 }
 0x33f   : > { %1282 = vrcp.f32 %v748_v52 }
 0x349   : > { %v1283_v39 = vpop.eup %1282 }
 0x34a   : > { %v750_v53 = vmul.f32 %v1283_v39, %v1281_v50 }
 0x34c   : > { %1161 = vmatmul.mubr.f32.vlgmr.msra.gmra.mrb[18].mxu1 %v750_v53  ;;  %823 = vst [vmem:[%s291_s14] sm:$0x1] %v750_v53 }
 0x34d   : > { %1297 = shalt.err (!%p1294_p3)
}
 0x34e   : > { %s1298_s8 = scalar_lea.hbm %s1605_s18, 16  ;;  %s1302_s16 = scalar_lea.hbm %s1681_s7, 32 }
 0x34f   : > { %p1299_p4 = scmp.ne.s32.totalorder %s1605_s18, %s1298_s8  ;;  %p1303_p9 = scmp.lt.u32.totalorder %s1605_s18, %s1681_s7 }
 0x350   : > { %p1304_p10 = scmp.lt.u32.totalorder %s1302_s16, %s1298_s8  ;;  %p1306_p12 = scmp.lt.u32.totalorder %s1298_s8, %s1605_s18 }
 0x351   : > { %p1300_p7 = pnand %p1299_p4, %p1463_p5 }
 0x352   : > { %p1305_p11 = por %p1304_p10, %p1303_p9 }
 0x353   : > { %p1301_p8 = pneg %p1300_p7 }
 0x354   : > { %p1307_p13 = por %p1306_p12, %p1305_p11 }
 0x356   : > { %p1308_p0 = pnand %p1307_p13, %p1301_p8 }
 0x358   : > { %1311 = shalt.err (!%p1308_p0)
}
 0x359   : > { %1234 = dma.vmem_to_hbm [thread:$0]  (%p1463_p5), %s855_s19, 16, %s1605_s18, %s829_s20   ;;  %vm821_vm5 = vcmask 253952  }
 0x35a   : > { %s285_s21 = scalar_lea.vmem [#allocation2], %s1596_s13  ;;  %s1631_s14 = scalar_lea.hbm %s1680_s6, %s986_s15 }
 0x35b   : > { %s841_s23 = sshll.u32 %s285_s21, 4  ;;  %s825_s8 = scalar_lea.sflag [#allocation3], %s1596_s13  ;;  %s1633_s23 = int_to_ptr.vmem [resolvable:$true] %s841_s23 }
 0x35c   : > { %s1312_s16 = scalar_lea.vmem %s1633_s23, 16  ;;  %s1384_s28 = smov [#allocation2]  }
 0x35d   : > { %p1313_p1 = scmp.ne.s32.totalorder %s1633_s23, %s1312_s16  ;;  %s1316_s18 = sshll.u32 %s1384_s28, 4  ;;  %s1317_s18 = int_to_ptr.vmem [resolvable:$false] %s1316_s18 }
 0x35e   : > { %s1318_s19 = scalar_lea.vmem %s1317_s18, 32  ;;  %p1319_p4 = scmp.lt.s32.totalorder %s1633_s23, %s1317_s18 }
 0x35f   : > { %p1314_p2 = pnand %p1313_p1, %p1463_p5  ;;  %p1320_p7 = scmp.lt.s32.totalorder %s1318_s19, %s1312_s16 }
 0x361   : > { %p1315_p3 = pneg %p1314_p2  ;;  %p1321_p8 = por %p1320_p7, %p1319_p4 }
 0x363   : > { %p1322_p9 = pnand %p1321_p8, %p1315_p3 }
 0x41f   : > { %v817_v54 = vpop.f32.mrb[18].mxu1 }
 0x420   : > { %822 = vst.msk [vmem:[%s285_s21] sm:$0x1] %vm821_vm5, %v817_v54  ;;  %v1162_v55 = vpop.f32.mrb[19].mxu1 }
 0x421   : > { %1325 = shalt.err (!%p1322_p9)
}
 0x422   : > { %s1326_s13 = scalar_lea.hbm %s1631_s14, 16  ;;  %s1330_s17 = scalar_lea.hbm %s1680_s6, 32 }
 0x423   : > { %p1327_p10 = scmp.ne.s32.totalorder %s1631_s14, %s1326_s13  ;;  %p1331_p13 = scmp.lt.u32.totalorder %s1631_s14, %s1680_s6 }
 0x424   : > { %p1332_p0 = scmp.lt.u32.totalorder %s1330_s17, %s1326_s13  ;;  %p1334_p2 = scmp.lt.u32.totalorder %s1326_s13, %s1631_s14 }
 0x425   : > { %p1328_p11 = pnand %p1327_p10, %p1463_p5 }
 0x426   : > { %p1333_p1 = por %p1332_p0, %p1331_p13 }
 0x427   : > { %p1329_p12 = pneg %p1328_p11 }
 0x428   : > { %p1335_p3 = por %p1334_p2, %p1333_p1 }
 0x42a   : > { %p1336_p4 = pnand %p1335_p3, %p1329_p12 }
 0x42c   : > { %1339 = shalt.err (!%p1336_p4)
}
 0x42d   : > { %1233 = dma.vmem_to_hbm [thread:$0]  (%p1463_p5), %s1633_s23, 16, %s1631_s14, %s825_s8  }
 0x42e PF: > { %p1244_p7 = scmp.ge.s32.totalorder %s1378_s27, 2  ;;  %s866_s29 = sand.u32 1, %s1366_s24  }
 0x42f   : > { %s867_s9 = scalar_lea.sflag [#allocation3], %s866_s29 }
 0x430   : > { %p1238_p8 = pnand %p1244_p7, %p1467_p6 }
 0x432   : > { %1357 = dma.done.wait (!%p1238_p8), %s867_s9, 16  }
 0x433   : > { %1359 = vsyncadd (!%p1238_p8), %s867_s9, 4294967280  ;;  %s875_s16 = scalar_lea.sflag [#allocation5], %s866_s29 }
 0x434   : > { %1361 = dma.done.wait (!%p1238_p8), %s875_s16, 16  }
 0x435   : > { %1363 = vsyncadd (!%p1238_p8), %s875_s16, 4294967280  ;;  %p21_p5 = scmp.ge.s32.totalorder %s1450_s30, 4   ;;  %s1686_s24 = smov %s1370_s25 }
 0x436   : > { %s1687_s25 = smov %s1374_s26  ;;  %s1688_s26 = smov %s1461_s10 }
 0x437   : > { %s1689_s27 = smov %s1450_s30  ;;  %23 = sbr.rel (!%p21_p5) target bundleno = 5 (0x5), region = 99 }
 0x43e   :  { %879 = vsyncpa [#allocation3], 1 }
 0x43f   :  { %881 = vsyncpa [#allocation3 + $0x1], 1 }
 0x440   :  { %882 = vsyncpa [#allocation5], 1 }
 0x441   :  { %884 = vsyncpa [#allocation5 + $0x1], 1 }

</bundles_post_ra>
